<compile_context>
chip_gen: v6e
topology: v6e:2x2x1
jax: 0.10.0
libtpu: 0.0.40
codegen_flags: <defaults>
</compile_context>

<pallas_src>
import jax
import jax.numpy as jnp
import numpy as np
from jax.experimental import pallas as pl
from jax.experimental.pallas import tpu as pltpu

_MIB = 1 << 20
# Conservative resident budget that fits every generation (v7x scoped default is
# 32 MiB of its 64 MiB per-core VMEM); leaves room for output double-buffers.
_VMEM_BUDGET = 24 * _MIB


def _round_up(v, m):
    return ((v + m - 1) // m) * m


def _block_vmem_bytes(shape, itemsize):
    """Rough VMEM footprint of one block: last dim pads to 128 lanes, 2nd-last to 8."""
    s = list(shape)
    s[-1] = _round_up(s[-1], 128)
    if len(s) >= 2:
        s[-2] = _round_up(s[-2], 8)
    n = 1
    for d in s:
        n *= d
    return n * itemsize


def _cutmix_resident_kernel(rand_ref, rep_ref, x_ref, out_ref):
    """One grid step = one batch sample; the whole x stays resident in VMEM.

    rand_ref: SMEM (N,) int32 partner indices (scalar-prefetched).
    rep_ref : VMEM (1, 1, HW) int8 -- 1 where this position comes from the partner.
    x_ref   : VMEM (N, C, HW) -- full feature map, DMA'd once (constant index_map).
    out_ref : VMEM (1, C, HW)
    """
    n = pl.program_id(0)
    partner = rand_ref[n]
    hit = rep_ref[0] != 0                                     # (1, HW) lane-major mask
    # Single vselect; mask broadcasts over the C (sublane) dimension.
    out_ref[0] = jnp.where(hit, x_ref[partner], x_ref[n]).astype(out_ref.dtype)


def _cutmix_streamed_kernel(rand_ref, rep_ref, x_ref, x_hbm_ref, out_ref, pbuf, sem):
    """One grid step = B samples; partner rows gathered via manual 2-deep DMA.

    rand_ref : SMEM (N,) int32 partner indices.
    rep_ref  : VMEM (B, 1, HW) int8 replacement mask.
    x_ref    : VMEM (B, C, HW) this step's samples (auto-pipelined).
    x_hbm_ref: HBM  (N, C, HW) full feature map (memory_space=pl.ANY).
    out_ref  : VMEM (B, C, HW)
    pbuf     : VMEM (2, C, HW) partner double buffer.
    sem      : DMA semaphores (2,).
    """
    g = pl.program_id(0)
    B = x_ref.shape[0]

    def start_fetch(idx_scalar, slot):
        pltpu.make_async_copy(
            x_hbm_ref.at[idx_scalar], pbuf.at[slot], sem.at[slot]).start()

    start_fetch(rand_ref[g * B], 0)
    for i in range(B):                       # B is a small static constant -> unrolled
        slot = i % 2
        # Read the next partner index before the wait (DMA .wait() breaks SMEM
        # store->load forwarding for unrelated scalar reads).
        nxt = rand_ref[g * B + i + 1] if i + 1 < B else None
        pltpu.make_async_copy(x_hbm_ref.at[0], pbuf.at[slot], sem.at[slot]).wait()
        if nxt is not None:
            start_fetch(nxt, 1 - slot)       # prefetch next partner into other slot
        hit = rep_ref[i] != 0
        out_ref[i] = jnp.where(hit, pbuf[slot], x_ref[i]).astype(out_ref.dtype)


def cutmix_batch_drop(x_nchw, cam, y, step, k, randy, path="auto"):
    """Training-mode forward of CutMixBatchDrop.

    x_nchw: [N, C, H, W] float feature map
    cam:    [N, H, W]    grad-cam map
    y:      [N, 1]       labels
    step:   (step_h, step_w). The reference hard-codes H=24, W=8, step=(3, 2).
    k:      number of highest-cam patches replaced by the partner sample
    randy:  [N] int32 partner indices
    path:   "auto" | "resident" | "streamed"
    Returns (x_new [N,C,H,W], rand_idx [N], lamda float).
    """
    if randy is None:
        # TODO(synk): the randy=None path of the reference uses host-side python
        # `random` partner selection; pass explicit indices instead.
        raise ValueError("randy (partner indices) must be provided")

    N, C, H, W = x_nchw.shape
    s0, s1 = step
    n_rows = H // s0
    n_cols = W // s1
    HW = H * W
    itemsize = jnp.dtype(x_nchw.dtype).itemsize

    # ---- patch scores from the cam (mirrors torch split/stack/cat/sum) ----
    patches = cam.reshape(N, n_rows, s0, n_cols, s1)
    patches = jnp.transpose(patches, (0, 3, 1, 2, 4)).reshape(N, n_cols * n_rows, s0 * s1)
    patch_sums = patches.sum(axis=-1)                         # [N, n_patches]
    # TODO(synk): lax.top_k tie-breaking can differ from torch.sort(descending=True)
    # when patch sums tie; equal-score patches may then be selected differently.
    _, topk_idx = jax.lax.top_k(patch_sums, k)
    topk_idx = topk_idx.astype(jnp.int32)

    # ---- static per-position patch id (same ordering as the torch split/cat) ----
    hh = np.arange(H)[:, None]
    ww = np.arange(W)[None, :]
    pid = jnp.asarray(((ww // s1) * n_rows + (hh // s0)).reshape(HW), jnp.int32)

    # ---- tiny int8 per-sample replacement mask (N*HW bytes), built in plain JAX ----
    replaced = (pid[None, None, :] == topk_idx[:, :, None]).any(axis=1)    # (N, HW) bool
    replaced = replaced.reshape(N, 1, HW).astype(jnp.int8)

    rand_idx = randy.astype(jnp.int32)
    _ = y[rand_idx]     # y2 is computed (but unused) in the reference; keep parity

    # ---- Pallas kernel: cutmix blend in the native (N, C, H*W) layout ----
    x3 = x_nchw.reshape(N, C, HW)             # free reshape, no transpose
    x_bytes = N * C * HW * itemsize
    mask_bytes = N * HW

    # Resident path VMEM footprint (assume 2x buffering of everything).
    resident_need = (2 * _block_vmem_bytes((N, C, HW), itemsize)
                     + 2 * _block_vmem_bytes((1, C, HW), itemsize)
                     + 2 * _block_vmem_bytes((1, 1, HW), 1))
    use_resident = (path == "resident") or (
        path == "auto" and resident_need <= _VMEM_BUDGET)
    if path == "streamed":
        use_resident = False

    if use_resident:
        grid_spec = pltpu.PrefetchScalarGridSpec(
            num_scalar_prefetch=1,                               # rand_idx -> SMEM
            grid=(N,),
            in_specs=[
                pl.BlockSpec((1, 1, HW), lambda n, rd: (n, 0, 0)),   # replacement mask
                pl.BlockSpec((N, C, HW), lambda n, rd: (0, 0, 0)),   # resident full x
            ],
            out_specs=pl.BlockSpec((1, C, HW), lambda n, rd: (n, 0, 0)),
        )
        x_new = pl.pallas_call(
            _cutmix_resident_kernel,
            out_shape=jax.ShapeDtypeStruct((N, C, HW), x3.dtype),
            grid_spec=grid_spec,
            compiler_params=pltpu.CompilerParams(
                # "arbitrary": a "parallel" batch axis on v7x would make each core
                # DMA its own full copy of the resident x, doubling HBM reads.
                dimension_semantics=("arbitrary",),
                vmem_limit_bytes=max(resident_need + 4 * _MIB, 32 * _MIB),
            ),
            cost_estimate=pl.CostEstimate(
                flops=0, transcendentals=0,
                bytes_accessed=2 * x_bytes + mask_bytes),
        )(rand_idx, replaced, x3)
    else:
        # Pick the largest per-step sample block B that divides N and fits VMEM.
        B, streamed_need = 1, None
        for cand in (8, 4, 2, 1):
            if N % cand:
                continue
            need = (2 * _block_vmem_bytes((cand, 1, HW), 1)
                    + 4 * _block_vmem_bytes((cand, C, HW), itemsize)   # x + out, 2-buf each
                    + _block_vmem_bytes((2, C, HW), itemsize))         # partner scratch
            if need <= _VMEM_BUDGET or cand == 1:
                B, streamed_need = cand, need
                break
        grid_spec = pltpu.PrefetchScalarGridSpec(
            num_scalar_prefetch=1,                               # rand_idx -> SMEM
            grid=(N // B,),
            in_specs=[
                pl.BlockSpec((B, 1, HW), lambda g, rd: (g, 0, 0)),   # replacement mask
                pl.BlockSpec((B, C, HW), lambda g, rd: (g, 0, 0)),   # x[g*B:(g+1)*B]
                pl.BlockSpec(memory_space=pl.ANY),                   # full x in HBM
            ],
            out_specs=pl.BlockSpec((B, C, HW), lambda g, rd: (g, 0, 0)),
            scratch_shapes=[
                pltpu.VMEM((2, C, HW), x3.dtype),                    # partner 2-buffer
                pltpu.SemaphoreType.DMA((2,)),
            ],
        )
        x_new = pl.pallas_call(
            _cutmix_streamed_kernel,
            out_shape=jax.ShapeDtypeStruct((N, C, HW), x3.dtype),
            grid_spec=grid_spec,
            compiler_params=pltpu.CompilerParams(
                dimension_semantics=("parallel",),
                vmem_limit_bytes=max(streamed_need + 4 * _MIB, 32 * _MIB),
            ),
            cost_estimate=pl.CostEstimate(
                flops=0, transcendentals=0,
                bytes_accessed=3 * x_bytes + mask_bytes),
        )(rand_idx, replaced, x3, x3)

    x_new = x_new.reshape(N, C, H, W)         # free reshape back
    lamda = k * s0 * s1 / (H * W)
    return x_new, rand_idx, lamda


if __name__ == "__main__":
    key = jax.random.PRNGKey(0)
    kx, kc = jax.random.split(key)

    # The module's mask-index arithmetic hard-codes H=24, W=8, step=(3, 2);
    # channels shrunk 2048 -> 256 to keep the demo small.
    N, C, H, W = 4, 256, 24, 8
    step, k = (3, 2), 2

    x = jax.random.normal(kx, (N, C, H, W), jnp.float32)
    cam = jax.random.uniform(kc, (N, H, W), jnp.float32)
    y = jnp.arange(N, dtype=jnp.int32).reshape(N, 1)
    randy = jnp.asarray([1, 2, 3, 0], jnp.int32)   # deterministic partner shuffle

    # ---- pure-JAX reference ----
    s0, s1 = step
    p = cam.reshape(N, H // s0, s0, W // s1, s1)
    p = jnp.transpose(p, (0, 3, 1, 2, 4)).reshape(N, -1, s0 * s1)
    _, topk = jax.lax.top_k(p.sum(-1), k)
    hh = np.arange(H)[:, None]
    ww = np.arange(W)[None, :]
    pid_ref = jnp.asarray((ww // s1) * (H // s0) + (hh // s0))
    mask = jnp.ones((N, 1, H, W), jnp.float32)
    for j in range(k):
        hit = pid_ref[None] == topk[:, j][:, None, None]
        mask = jnp.where(hit[:, None, :, :], 0.0, mask)
    ref = mask * x + (1.0 - mask) * x[randy]

    # Resident-x fast path (taken automatically at these shapes).
    x_new, rand_idx, lamda = cutmix_batch_drop(x, cam, y, step, k, randy, path="auto")
    jax.block_until_ready(x_new)
    np.testing.assert_allclose(np.asarray(x_new), np.asarray(ref), rtol=1e-6, atol=1e-6)

    # Streamed path (manual partner-gather DMA) exercised explicitly as well.
    x_new_s, _, _ = cutmix_batch_drop(x, cam, y, step, k, randy, path="streamed")
    jax.block_until_ready(x_new_s)
    np.testing.assert_allclose(np.asarray(x_new_s), np.asarray(ref), rtol=1e-6, atol=1e-6)

    assert rand_idx.shape == (N,)
    assert abs(lamda - k * s0 * s1 / (H * W)) < 1e-9
    print("KERNEL_OK")
</pallas_src>

<mosaic_0001>
module attributes {stable_mosaic.version = 11 : i64} {
  func.func @_cutmix_resident_kernel(%arg0: i32, %arg1: memref<4xi32, #tpu.memory_space<smem>>, %arg2: memref<1x1x192xi8, #tpu.memory_space<vmem>>, %arg3: memref<4x256x192xf32, #tpu.memory_space<vmem>>, %arg4: memref<1x256x192xf32, #tpu.memory_space<vmem>>) attributes {dimension_semantics = [#tpu.dimension_semantics<arbitrary>], iteration_bounds = array<i64: 4>, scalar_prefetch = 1 : i64, scratch_operands = 0 : i64, tpu.core_type = #tpu.core_type<tc>, window_params = [{transform_indices = @transform_0, window_bounds = array<i64: 1, 1, 192>}, {pipeline_mode = #tpu.pipeline_mode<synchronous>, transform_indices = @transform_1, window_bounds = array<i64: 4, 256, 192>}, {transform_indices = @transform_2, window_bounds = array<i64: 1, 256, 192>}]} {
    %0 = arith.index_cast %arg0 : i32 to index
    %1 = memref.load %arg1[%0] : memref<4xi32, #tpu.memory_space<smem>>
    %c0 = arith.constant 0 : index
    %c0_0 = arith.constant 0 : index
    %c0_1 = arith.constant 0 : index
    %2 = vector.load %arg2[%c0, %c0_0, %c0_1] : memref<1x1x192xi8, #tpu.memory_space<vmem>>, vector<1x1x192xi8>
    %3 = vector.shape_cast %2 : vector<1x1x192xi8> to vector<1x192xi8>
    %c0_i8 = arith.constant 0 : i8
    %4 = vector.broadcast %c0_i8 : i8 to vector<1x192xi8>
    %5 = arith.cmpi ne, %3, %4 : vector<1x192xi8>
    %6 = arith.index_cast %1 : i32 to index
    %c0_2 = arith.constant 0 : index
    %c0_3 = arith.constant 0 : index
    %7 = vector.load %arg3[%6, %c0_2, %c0_3] : memref<4x256x192xf32, #tpu.memory_space<vmem>>, vector<1x256x192xf32>
    %8 = vector.shape_cast %7 : vector<1x256x192xf32> to vector<256x192xf32>
    %9 = arith.index_cast %arg0 : i32 to index
    %c0_4 = arith.constant 0 : index
    %c0_5 = arith.constant 0 : index
    %10 = vector.load %arg3[%9, %c0_4, %c0_5] : memref<4x256x192xf32, #tpu.memory_space<vmem>>, vector<1x256x192xf32>
    %11 = vector.shape_cast %10 : vector<1x256x192xf32> to vector<256x192xf32>
    %12 = vector.shape_cast %5 : vector<1x192xi1> to vector<1x192xi1>
    %13 = vector.broadcast %12 : vector<1x192xi1> to vector<256x192xi1>
    %14 = arith.select %13, %8, %11 : vector<256x192xi1>, vector<256x192xf32>
    %c0_6 = arith.constant 0 : index
    %c0_7 = arith.constant 0 : index
    %c0_8 = arith.constant 0 : index
    %15 = vector.load %arg4[%c0_6, %c0_7, %c0_8] : memref<1x256x192xf32, #tpu.memory_space<vmem>>, vector<1x256x192xf32>
    %16 = vector.shape_cast %15 : vector<1x256x192xf32> to vector<256x192xf32>
    %17 = vector.shape_cast %14 : vector<256x192xf32> to vector<1x256x192xf32>
    tpu.vector_store %arg4[%c0_6, %c0_7, %c0_8], %17 {strides = array<i32>} : memref<1x256x192xf32, #tpu.memory_space<vmem>>, vector<1x256x192xf32>,
    return
  }
  func.func @transform_0(%arg0: i32, %arg1: memref<4xi32, #tpu.memory_space<smem>>) -> (i32, i32, i32) {
    %c0_i32 = arith.constant 0 : i32
    %c0_i32_0 = arith.constant 0 : i32
    %c0_i32_1 = arith.constant 0 : i32
    return %arg0, %c0_i32, %c0_i32_0 : i32, i32, i32
  }
  func.func @transform_1(%arg0: i32, %arg1: memref<4xi32, #tpu.memory_space<smem>>) -> (i32, i32, i32) {
    %c0_i32 = arith.constant 0 : i32
    %c0_i32_0 = arith.constant 0 : i32
    %c0_i32_1 = arith.constant 0 : i32
    %c0_i32_2 = arith.constant 0 : i32
    return %c0_i32, %c0_i32_0, %c0_i32_1 : i32, i32, i32
  }
  func.func @transform_2(%arg0: i32, %arg1: memref<4xi32, #tpu.memory_space<smem>>) -> (i32, i32, i32) {
    %c0_i32 = arith.constant 0 : i32
    %c0_i32_0 = arith.constant 0 : i32
    %c0_i32_1 = arith.constant 0 : i32
    return %arg0, %c0_i32, %c0_i32_0 : i32, i32, i32
  }
}

</mosaic_0001>

<bundles_post_ra>
// kernel: tpu_custom_call.1
= control target key start
LH: loop header
LB: loop body
LE: loop exit
PB: predicated region body
PF: predicated region fallthrough
CT: control target
= control target key end

     0   :  { %s1018_s0 = inlined_call_operand.vmem [shape: s32[4], index: 0, kind: input, shape index: {}]   ;;  %s1019_s1 = inlined_call_operand.vmem [shape: s8[4,1,192], index: 1, kind: input, shape index: {}]   ;;  %s1020_s2 = inlined_call_operand.vmem [shape: f32[4,256,192], index: 2, kind: input, shape index: {}]   ;;  %s1021_s3 = inlined_call_operand.vmem [shape: f32[4,256,192], index: 3, kind: output, shape index: {}]  }
   0x1   :  { %s8_s14 = sshll.u32 %s1018_s0, 4  ;;  %s9_s14 = int_to_ptr.vmem [resolvable:$true] %s8_s14 }
   0x2   :  { %s528_s15 = scalar_lea.vmem %s9_s14, 16  ;;  %p533_p1 = scmp.lt.s32.totalorder %s9_s14, %s9_s14 }
   0x3   :  { %p529_p0 = scmp.ne.s32.totalorder %s9_s14, %s528_s15  ;;  %p534_p2 = scmp.lt.s32.totalorder %s528_s15, %s528_s15 }
   0x5   :  { %p535_p3 = por %p534_p2, %p533_p1 }
   0x7   :  { %p536_p4 = pnand %p535_p3, %p529_p0 }
   0x9   :  { %539 = shalt.err (!%p536_p4)  }
   0xa   :  { %s550_s16 = smov [#allocation3]  }
   0xb   :  { %11 = dma.vmem_to_smem %s9_s14, 16, %s550_s16, [#allocation2] }
   0xc   :  { %544 = dma.done.wait [#allocation2], 16 }
   0xd   :  { %545 = vsyncadd [#allocation2], 4294967280 }
   0xe   :  { %13 = sfence }
   0xf   :  { %s575_s17 = smov 0  }
  0x10 LB: > { %s501_s0 = sadd.s32 4294967295, %s548_s17   ;;  %p505_p5 = scmp.ge.s32.totalorder %s548_s17, 1  ;;  %s548_s17 = sphi %s575_s17, %s19_s17  }
  0x11   : > { %p118_p6 = scmp.lt.s32.totalorder %s548_s17, 5 }
  0x13   : > { %p119_p7 = pnand %p505_p5, %p118_p6 }
  0x14   : > { %p139_p8 = scmp.lt.s32.totalorder (!%p119_p7), %s501_s0, 3  ;;  %s150_s18 = sld [smem:[#allocation3 + %s501_s0]] (!%p119_p7) }
  0x15   : > { %122 = sbr.rel (%p119_p7) target bundleno = 82 (0x52), region = 28  ;;  %s517_s25 = sshll.u32 (!%p119_p7), %s501_s0, 9 }
  0x16   : > { %s597_s4 = scalar_lea.vmem (!%p119_p7), %s1020_s2, %s517_s25 }
  0x1a   : > { %v291_v0 = vlaneseq  ;;  %s583_s19 = scalar_select %p139_p8, %s501_s0, 3  ;;  %v551_v3 = vmov 0   ;;  %v223_v12 = vld [vmem:[%s597_s4] sm:$0xff]  ;;  %v224_v14 = vld [vmem:[%s597_s4 + $0x8] sm:$0xff]  ;;  %v225_v16 = vld [vmem:[%s597_s4 + $0x10] sm:$0xff]  ;;  %vm378_vm4 = vcmask 523264  }
  0x1b   : > { %s516_s24 = sshll.u32 %s150_s18, 9  ;;  %v226_v18 = vld [vmem:[%s597_s4 + $0x18] sm:$0xff]  ;;  %v227_v22 = vld [vmem:[%s597_s4 + $0x20] sm:$0xff]  ;;  %v228_v24 = vld [vmem:[%s597_s4 + $0x28] sm:$0xff] }
  0x1c   : > { %s506_s20 = sshll.u32 %s583_s19, 1  ;;  %v292_v1 = vshrl.u32 %v291_v0, 7  ;;  %s592_s28 = scalar_lea.vmem %s1020_s2, %s516_s24  ;;  %v229_v26 = vld [vmem:[%s597_s4 + $0x30] sm:$0xff]  ;;  %v230_v28 = vld [vmem:[%s597_s4 + $0x38] sm:$0xff]  ;;  %v231_v32 = vld [vmem:[%s597_s4 + $0x40] sm:$0xff] }
  0x1d   : > { %s142_s23 = scalar_lea.vmem %s1019_s1, %s506_s20  ;;  %s515_s5 = sshll.u32 %s583_s19, 9  ;;  %v156_v11 = vld [vmem:[%s592_s28] sm:$0xff]  ;;  %v157_v13 = vld [vmem:[%s592_s28 + $0x8] sm:$0xff]  ;;  %v158_v15 = vld [vmem:[%s592_s28 + $0x10] sm:$0xff] }
  0x1e   : > { %v151_v2 = vld [vmem:[%s142_s23] sm:$0x3]  ;;  %v293_v6 = vsub.s32 0, %v292_v1  ;;  %v297_v7 = vsub.s32 4, %v292_v1  ;;  %v159_v17 = vld [vmem:[%s592_s28 + $0x18] sm:$0xff]  ;;  %v161_v23 = vld [vmem:[%s592_s28 + $0x28] sm:$0xff]  ;;  %s633_s8 = scalar_lea.vmem %s1021_s3, %s515_s5 }
  0x1f   : > { %vm152_vm0 = vnez %v151_v2  ;;  %v160_v21 = vld [vmem:[%s592_s28 + $0x20] sm:$0xff]  ;;  %v162_v25 = vld [vmem:[%s592_s28 + $0x30] sm:$0xff]  ;;  %v163_v27 = vld [vmem:[%s592_s28 + $0x38] sm:$0xff] }
  0x20   : > { %v287_v4 = vsel %vm152_vm0, 16843009, %v551_v3  ;;  %v617_v31 = vld [vmem:[%s592_s28 + $0x40] sm:$0xff]  ;;  %v621_v33 = vld [vmem:[%s592_s28 + $0x48] sm:$0xff]  ;;  %v166_v35 = vld [vmem:[%s592_s28 + $0x50] sm:$0xff] }
  0x21   : > { %v288_v5 = vunpack.c.0.s8 %v287_v4  ;;  %v232_v34 = vld [vmem:[%s597_s4 + $0x48] sm:$0xff]  ;;  %v233_v36 = vld [vmem:[%s597_s4 + $0x50] sm:$0xff]  ;;  %v167_v37 = vld [vmem:[%s592_s28 + $0x58] sm:$0xff] }
  0x22   : > { %v234_v38 = vld [vmem:[%s597_s4 + $0x58] sm:$0xff]  ;;  %v636_v39 = vld [vmem:[%s592_s28 + $0x60] sm:$0xff]  ;;  %v642_v41 = vld [vmem:[%s592_s28 + $0x68] sm:$0xff] }
  0x23   : > { %vm289_vm1 = vcmp.ne.s32.totalorder %v288_v5, 0  ;;  %v639_v40 = vld [vmem:[%s597_s4 + $0x60] sm:$0xff]  ;;  %v645_v42 = vld [vmem:[%s597_s4 + $0x68] sm:$0xff]  ;;  %v170_v43 = vld [vmem:[%s592_s28 + $0x70] sm:$0xff] }
  0x24   : > { %v290_v8 = vsel %vm289_vm1, 1, %v551_v3  ;;  %v237_v44 = vld [vmem:[%s597_s4 + $0x70] sm:$0xff]  ;;  %v171_v45 = vld [vmem:[%s592_s28 + $0x78] sm:$0xff]  ;;  %v660_v49 = vld [vmem:[%s592_s28 + $0x80] sm:$0xff] }
  0x25   : > { %v294_v9 = vrot.slane %v290_v8, %v293_v6  ;;  %v298_v10 = vrot.slane %v290_v8, %v297_v7  ;;  %v238_v46 = vld [vmem:[%s597_s4 + $0x78] sm:$0xff]  ;;  %v663_v50 = vld [vmem:[%s597_s4 + $0x80] sm:$0xff]  ;;  %v666_v51 = vld [vmem:[%s592_s28 + $0x88] sm:$0xff] }
  0x26   : > { %v669_v52 = vld [vmem:[%s597_s4 + $0x88] sm:$0xff]  ;;  %v672_v53 = vld [vmem:[%s592_s28 + $0x90] sm:$0xff]  ;;  %v676_v55 = vld [vmem:[%s592_s28 + $0x98] sm:$0xff] }
  0x27   : > { %vm299_vm2 = vcmp.ne.s32.totalorder %v294_v9, 0  ;;  %vm300_vm3 = vcmp.ne.s32.totalorder %v298_v10, 0  ;;  %v241_v54 = vld [vmem:[%s597_s4 + $0x90] sm:$0xff]  ;;  %v242_v56 = vld [vmem:[%s597_s4 + $0x98] sm:$0xff]  ;;  %v688_v61 = vld [vmem:[%s592_s28 + $0xa0] sm:$0xff] }
  0x28   : > { %v301_v19 = vsel %vm299_vm2, 1, %v551_v3  ;;  %v302_v20 = vsel %vm300_vm3, 1, %v551_v3  ;;  %v691_v62 = vld [vmem:[%s597_s4 + $0xa0] sm:$0xff]  ;;  %v694_v63 = vld [vmem:[%s592_s28 + $0xa8] sm:$0xff]  ;;  %v178_v1 = vld [vmem:[%s592_s28 + $0xb0] sm:$0xff] }
  0x29   : > { %v306_v29 = vrot.slane %v301_v19, %v293_v6  ;;  %v310_v30 = vrot.slane %v302_v20, %v293_v6  ;;  %v697_v0 = vld [vmem:[%s597_s4 + $0xa8] sm:$0xff]  ;;  %v245_v2 = vld [vmem:[%s597_s4 + $0xb0] sm:$0xff]  ;;  %v179_v3 = vld [vmem:[%s592_s28 + $0xb8] sm:$0xff] }
  0x2a   : > { %v246_v4 = vld [vmem:[%s597_s4 + $0xb8] sm:$0xff]  ;;  %v180_v9 = vld [vmem:[%s592_s28 + $0xc0] sm:$0xff] }
  0x2b   : > { %vm651_vm5 = vcmp.eq.s32.totalorder %v306_v29, 1  ;;  %vm655_vm6 = vcmp.eq.s32.totalorder %v310_v30, 1  ;;  %v247_v10 = vld [vmem:[%s597_s4 + $0xc0] sm:$0xff]  ;;  %v183_v19 = vld [vmem:[%s592_s28 + $0xd8] sm:$0xff] }
  0x2c   : > { %v313_v57 = vsel %vm651_vm5, %v156_v11, %v223_v12  ;;  %v314_v58 = vsel %vm655_vm6, %v157_v13, %v224_v14  ;;  %v315_v59 = vsel %vm651_vm5, %v158_v15, %v225_v16  ;;  %v316_v60 = vsel %vm655_vm6, %v159_v17, %v226_v18  ;;  %v181_v11 = vld [vmem:[%s592_s28 + $0xc8] sm:$0xff]  ;;  %v182_v17 = vld [vmem:[%s592_s28 + $0xd0] sm:$0xff] }
  0x2d   : > { %377 = vst [vmem:[%s633_s8] sm:$0xff] %v313_v57  ;;  %379 = vst.msk [vmem:[%s633_s8 + $0x8] sm:$0xff] %vm378_vm4, %v314_v58  ;;  %v317_v5 = vsel %vm651_vm5, %v160_v21, %v227_v22  ;;  %v318_v6 = vsel %vm655_vm6, %v161_v23, %v228_v24  ;;  %v319_v7 = vsel %vm651_vm5, %v162_v25, %v229_v26  ;;  %v248_v12 = vld [vmem:[%s597_s4 + $0xc8] sm:$0xff]  ;;  %v249_v18 = vld [vmem:[%s597_s4 + $0xd0] sm:$0xff] }
  0x2e   : > { %380 = vst [vmem:[%s633_s8 + $0x10] sm:$0xff] %v315_v59  ;;  %381 = vst.msk [vmem:[%s633_s8 + $0x18] sm:$0xff] %vm378_vm4, %v316_v60  ;;  %v320_v8 = vsel %vm655_vm6, %v163_v27, %v230_v28  ;;  %v321_v13 = vsel %vm651_vm5, %v617_v31, %v231_v32  ;;  %v322_v14 = vsel %vm655_vm6, %v621_v33, %v232_v34  ;;  %v250_v24 = vld [vmem:[%s597_s4 + $0xd8] sm:$0xff]  ;;  %v184_v25 = vld [vmem:[%s592_s28 + $0xe0] sm:$0xff] }
  0x2f   : > { %382 = vst [vmem:[%s633_s8 + $0x20] sm:$0xff] %v317_v5  ;;  %383 = vst.msk [vmem:[%s633_s8 + $0x28] sm:$0xff] %vm378_vm4, %v318_v6  ;;  %v323_v15 = vsel %vm651_vm5, %v166_v35, %v233_v36  ;;  %v324_v16 = vsel %vm655_vm6, %v167_v37, %v234_v38  ;;  %v325_v20 = vsel %vm651_vm5, %v636_v39, %v639_v40  ;;  %v251_v26 = vld [vmem:[%s597_s4 + $0xe0] sm:$0xff]  ;;  %v185_v31 = vld [vmem:[%s592_s28 + $0xe8] sm:$0xff] }
  0x30   : > { %384 = vst [vmem:[%s633_s8 + $0x30] sm:$0xff] %v319_v7  ;;  %385 = vst.msk [vmem:[%s633_s8 + $0x38] sm:$0xff] %vm378_vm4, %v320_v8  ;;  %v326_v21 = vsel %vm655_vm6, %v642_v41, %v645_v42  ;;  %v327_v22 = vsel %vm651_vm5, %v170_v43, %v237_v44  ;;  %v328_v23 = vsel %vm655_vm6, %v171_v45, %v238_v46  ;;  %v252_v32 = vld [vmem:[%s597_s4 + $0xe8] sm:$0xff]  ;;  %v186_v33 = vld [vmem:[%s592_s28 + $0xf0] sm:$0xff] }
  0x31   : > { %386 = vst [vmem:[%s633_s8 + $0x40] sm:$0xff] %v321_v13  ;;  %387 = vst.msk [vmem:[%s633_s8 + $0x48] sm:$0xff] %vm378_vm4, %v322_v14  ;;  %v329_v27 = vsel %vm651_vm5, %v660_v49, %v663_v50  ;;  %v330_v28 = vsel %vm655_vm6, %v666_v51, %v669_v52  ;;  %v331_v29 = vsel %vm651_vm5, %v672_v53, %v241_v54  ;;  %v253_v38 = vld [vmem:[%s597_s4 + $0xf0] sm:$0xff]  ;;  %v187_v39 = vld [vmem:[%s592_s28 + $0xf8] sm:$0xff] }
  0x32   : > { %388 = vst [vmem:[%s633_s8 + $0x50] sm:$0xff] %v323_v15  ;;  %389 = vst.msk [vmem:[%s633_s8 + $0x58] sm:$0xff] %vm378_vm4, %v324_v16  ;;  %v332_v30 = vsel %vm655_vm6, %v676_v55, %v242_v56  ;;  %v333_v34 = vsel %vm651_vm5, %v688_v61, %v691_v62  ;;  %v334_v35 = vsel %vm655_vm6, %v694_v63, %v697_v0  ;;  %v254_v40 = vld [vmem:[%s597_s4 + $0xf8] sm:$0xff]  ;;  %v188_v45 = vld [vmem:[%s592_s28 + $0x100] sm:$0xff] }
  0x33   : > { %390 = vst [vmem:[%s633_s8 + $0x60] sm:$0xff] %v325_v20  ;;  %391 = vst.msk [vmem:[%s633_s8 + $0x68] sm:$0xff] %vm378_vm4, %v326_v21  ;;  %v335_v36 = vsel %vm651_vm5, %v178_v1, %v245_v2  ;;  %v336_v37 = vsel %vm655_vm6, %v179_v3, %v246_v4  ;;  %v337_v41 = vsel %vm651_vm5, %v180_v9, %v247_v10  ;;  %v255_v46 = vld [vmem:[%s597_s4 + $0x100] sm:$0xff]  ;;  %v189_v49 = vld [vmem:[%s592_s28 + $0x108] sm:$0xff] }
  0x34   : > { %392 = vst [vmem:[%s633_s8 + $0x70] sm:$0xff] %v327_v22  ;;  %393 = vst.msk [vmem:[%s633_s8 + $0x78] sm:$0xff] %vm378_vm4, %v328_v23  ;;  %v338_v42 = vsel %vm655_vm6, %v181_v11, %v248_v12  ;;  %v339_v43 = vsel %vm651_vm5, %v182_v17, %v249_v18  ;;  %v340_v44 = vsel %vm655_vm6, %v183_v19, %v250_v24  ;;  %v256_v54 = vld [vmem:[%s597_s4 + $0x108] sm:$0xff]  ;;  %v190_v55 = vld [vmem:[%s592_s28 + $0x110] sm:$0xff] }
  0x35   : > { %394 = vst [vmem:[%s633_s8 + $0x80] sm:$0xff] %v329_v27  ;;  %395 = vst.msk [vmem:[%s633_s8 + $0x88] sm:$0xff] %vm378_vm4, %v330_v28  ;;  %v341_v50 = vsel %vm651_vm5, %v184_v25, %v251_v26  ;;  %v342_v51 = vsel %vm655_vm6, %v185_v31, %v252_v32  ;;  %v343_v52 = vsel %vm651_vm5, %v186_v33, %v253_v38  ;;  %v257_v56 = vld [vmem:[%s597_s4 + $0x110] sm:$0xff]  ;;  %v191_v60 = vld [vmem:[%s592_s28 + $0x118] sm:$0xff] }
  0x36   : > { %396 = vst [vmem:[%s633_s8 + $0x90] sm:$0xff] %v331_v29  ;;  %397 = vst.msk [vmem:[%s633_s8 + $0x98] sm:$0xff] %vm378_vm4, %v332_v30  ;;  %v344_v53 = vsel %vm655_vm6, %v187_v39, %v254_v40  ;;  %v345_v57 = vsel %vm651_vm5, %v188_v45, %v255_v46  ;;  %v346_v58 = vsel %vm655_vm6, %v189_v49, %v256_v54  ;;  %v258_v61 = vld [vmem:[%s597_s4 + $0x118] sm:$0xff]  ;;  %v192_v62 = vld [vmem:[%s592_s28 + $0x120] sm:$0xff] }
  0x37   : > { %398 = vst [vmem:[%s633_s8 + $0xa0] sm:$0xff] %v333_v34  ;;  %399 = vst.msk [vmem:[%s633_s8 + $0xa8] sm:$0xff] %vm378_vm4, %v334_v35  ;;  %v347_v59 = vsel %vm651_vm5, %v190_v55, %v257_v56  ;;  %v348_v63 = vsel %vm655_vm6, %v191_v60, %v258_v61  ;;  %v259_v0 = vld [vmem:[%s597_s4 + $0x120] sm:$0xff]  ;;  %v193_v1 = vld [vmem:[%s592_s28 + $0x128] sm:$0xff] }
  0x38   : > { %400 = vst [vmem:[%s633_s8 + $0xb0] sm:$0xff] %v335_v36  ;;  %401 = vst.msk [vmem:[%s633_s8 + $0xb8] sm:$0xff] %vm378_vm4, %v336_v37  ;;  %v260_v2 = vld [vmem:[%s597_s4 + $0x128] sm:$0xff]  ;;  %v349_v3 = vsel %vm651_vm5, %v192_v62, %v259_v0  ;;  %v194_v5 = vld [vmem:[%s592_s28 + $0x130] sm:$0xff] }
  0x39   : > { %402 = vst [vmem:[%s633_s8 + $0xc0] sm:$0xff] %v337_v41  ;;  %403 = vst.msk [vmem:[%s633_s8 + $0xc8] sm:$0xff] %vm378_vm4, %v338_v42  ;;  %v350_v4 = vsel %vm655_vm6, %v193_v1, %v260_v2  ;;  %v261_v6 = vld [vmem:[%s597_s4 + $0x130] sm:$0xff]  ;;  %v195_v7 = vld [vmem:[%s592_s28 + $0x138] sm:$0xff] }
  0x3a   : > { %404 = vst [vmem:[%s633_s8 + $0xd0] sm:$0xff] %v339_v43  ;;  %405 = vst.msk [vmem:[%s633_s8 + $0xd8] sm:$0xff] %vm378_vm4, %v340_v44  ;;  %v351_v8 = vsel %vm651_vm5, %v194_v5, %v261_v6  ;;  %v262_v9 = vld [vmem:[%s597_s4 + $0x138] sm:$0xff]  ;;  %v196_v10 = vld [vmem:[%s592_s28 + $0x140] sm:$0xff] }
  0x3b   : > { %406 = vst [vmem:[%s633_s8 + $0xe0] sm:$0xff] %v341_v50  ;;  %407 = vst.msk [vmem:[%s633_s8 + $0xe8] sm:$0xff] %vm378_vm4, %v342_v51  ;;  %v263_v11 = vld [vmem:[%s597_s4 + $0x140] sm:$0xff]  ;;  %v352_v12 = vsel %vm655_vm6, %v195_v7, %v262_v9  ;;  %v197_v14 = vld [vmem:[%s592_s28 + $0x148] sm:$0xff] }
  0x3c   : > { %408 = vst [vmem:[%s633_s8 + $0xf0] sm:$0xff] %v343_v52  ;;  %409 = vst.msk [vmem:[%s633_s8 + $0xf8] sm:$0xff] %vm378_vm4, %v344_v53  ;;  %v353_v13 = vsel %vm651_vm5, %v196_v10, %v263_v11  ;;  %v264_v15 = vld [vmem:[%s597_s4 + $0x148] sm:$0xff]  ;;  %v198_v16 = vld [vmem:[%s592_s28 + $0x150] sm:$0xff] }
  0x3d   : > { %410 = vst [vmem:[%s633_s8 + $0x100] sm:$0xff] %v345_v57  ;;  %411 = vst.msk [vmem:[%s633_s8 + $0x108] sm:$0xff] %vm378_vm4, %v346_v58  ;;  %v354_v17 = vsel %vm655_vm6, %v197_v14, %v264_v15  ;;  %v265_v18 = vld [vmem:[%s597_s4 + $0x150] sm:$0xff]  ;;  %v199_v19 = vld [vmem:[%s592_s28 + $0x158] sm:$0xff] }
  0x3e   : > { %412 = vst [vmem:[%s633_s8 + $0x110] sm:$0xff] %v347_v59  ;;  %413 = vst.msk [vmem:[%s633_s8 + $0x118] sm:$0xff] %vm378_vm4, %v348_v63  ;;  %v266_v20 = vld [vmem:[%s597_s4 + $0x158] sm:$0xff]  ;;  %v355_v21 = vsel %vm651_vm5, %v198_v16, %v265_v18  ;;  %v200_v23 = vld [vmem:[%s592_s28 + $0x160] sm:$0xff] }
  0x3f   : > { %414 = vst [vmem:[%s633_s8 + $0x120] sm:$0xff] %v349_v3  ;;  %415 = vst.msk [vmem:[%s633_s8 + $0x128] sm:$0xff] %vm378_vm4, %v350_v4  ;;  %v356_v22 = vsel %vm655_vm6, %v199_v19, %v266_v20  ;;  %v267_v24 = vld [vmem:[%s597_s4 + $0x160] sm:$0xff]  ;;  %v201_v25 = vld [vmem:[%s592_s28 + $0x168] sm:$0xff] }
  0x40   : > { %416 = vst [vmem:[%s633_s8 + $0x130] sm:$0xff] %v351_v8  ;;  %417 = vst.msk [vmem:[%s633_s8 + $0x138] sm:$0xff] %vm378_vm4, %v352_v12  ;;  %v357_v26 = vsel %vm651_vm5, %v200_v23, %v267_v24  ;;  %v268_v27 = vld [vmem:[%s597_s4 + $0x168] sm:$0xff]  ;;  %v202_v28 = vld [vmem:[%s592_s28 + $0x170] sm:$0xff] }
  0x41   : > { %418 = vst [vmem:[%s633_s8 + $0x140] sm:$0xff] %v353_v13  ;;  %419 = vst.msk [vmem:[%s633_s8 + $0x148] sm:$0xff] %vm378_vm4, %v354_v17  ;;  %v269_v29 = vld [vmem:[%s597_s4 + $0x170] sm:$0xff]  ;;  %v358_v30 = vsel %vm655_vm6, %v201_v25, %v268_v27  ;;  %v203_v32 = vld [vmem:[%s592_s28 + $0x178] sm:$0xff] }
  0x42   : > { %420 = vst [vmem:[%s633_s8 + $0x150] sm:$0xff] %v355_v21  ;;  %421 = vst.msk [vmem:[%s633_s8 + $0x158] sm:$0xff] %vm378_vm4, %v356_v22  ;;  %v359_v31 = vsel %vm651_vm5, %v202_v28, %v269_v29  ;;  %v270_v33 = vld [vmem:[%s597_s4 + $0x178] sm:$0xff]  ;;  %v204_v34 = vld [vmem:[%s592_s28 + $0x180] sm:$0xff] }
  0x43   : > { %422 = vst [vmem:[%s633_s8 + $0x160] sm:$0xff] %v357_v26  ;;  %423 = vst.msk [vmem:[%s633_s8 + $0x168] sm:$0xff] %vm378_vm4, %v358_v30  ;;  %v360_v35 = vsel %vm655_vm6, %v203_v32, %v270_v33  ;;  %v271_v36 = vld [vmem:[%s597_s4 + $0x180] sm:$0xff]  ;;  %v205_v37 = vld [vmem:[%s592_s28 + $0x188] sm:$0xff] }
  0x44   : > { %424 = vst [vmem:[%s633_s8 + $0x170] sm:$0xff] %v359_v31  ;;  %v272_v38 = vld [vmem:[%s597_s4 + $0x188] sm:$0xff]  ;;  %425 = vst.msk [vmem:[%s633_s8 + $0x178] sm:$0xff] %vm378_vm4, %v360_v35  ;;  %v361_v39 = vsel %vm651_vm5, %v204_v34, %v271_v36  ;;  %v206_v41 = vld [vmem:[%s592_s28 + $0x190] sm:$0xff] }
  0x45   : > { %v362_v40 = vsel %vm655_vm6, %v205_v37, %v272_v38  ;;  %v273_v42 = vld [vmem:[%s597_s4 + $0x190] sm:$0xff]  ;;  %v207_v43 = vld [vmem:[%s592_s28 + $0x198] sm:$0xff]  ;;  %426 = vst [vmem:[%s633_s8 + $0x180] sm:$0xff] %v361_v39  ;;  %v208_v46 = vld [vmem:[%s592_s28 + $0x1a0] sm:$0xff] }
  0x46   : > { %427 = vst.msk [vmem:[%s633_s8 + $0x188] sm:$0xff] %vm378_vm4, %v362_v40  ;;  %v363_v44 = vsel %vm651_vm5, %v206_v41, %v273_v42  ;;  %v274_v45 = vld [vmem:[%s597_s4 + $0x198] sm:$0xff]  ;;  %v275_v49 = vld [vmem:[%s597_s4 + $0x1a0] sm:$0xff]  ;;  %v209_v52 = vld [vmem:[%s592_s28 + $0x1a8] sm:$0xff] }
  0x47   : > { %428 = vst [vmem:[%s633_s8 + $0x190] sm:$0xff] %v363_v44  ;;  %v364_v50 = vsel %vm655_vm6, %v207_v43, %v274_v45  ;;  %v365_v51 = vsel %vm651_vm5, %v208_v46, %v275_v49  ;;  %v276_v53 = vld [vmem:[%s597_s4 + $0x1a8] sm:$0xff]  ;;  %v210_v54 = vld [vmem:[%s592_s28 + $0x1b0] sm:$0xff]  ;;  %v211_v57 = vld [vmem:[%s592_s28 + $0x1b8] sm:$0xff] }
  0x48   : > { %429 = vst.msk [vmem:[%s633_s8 + $0x198] sm:$0xff] %vm378_vm4, %v364_v50  ;;  %430 = vst [vmem:[%s633_s8 + $0x1a0] sm:$0xff] %v365_v51  ;;  %v366_v55 = vsel %vm655_vm6, %v209_v52, %v276_v53  ;;  %v277_v56 = vld [vmem:[%s597_s4 + $0x1b0] sm:$0xff]  ;;  %v278_v58 = vld [vmem:[%s597_s4 + $0x1b8] sm:$0xff] }
  0x49   : > { %431 = vst.msk [vmem:[%s633_s8 + $0x1a8] sm:$0xff] %vm378_vm4, %v366_v55  ;;  %v367_v59 = vsel %vm651_vm5, %v210_v54, %v277_v56  ;;  %v368_v60 = vsel %vm655_vm6, %v211_v57, %v278_v58  ;;  %v212_v61 = vld [vmem:[%s592_s28 + $0x1c0] sm:$0xff]  ;;  %v213_v63 = vld [vmem:[%s592_s28 + $0x1c8] sm:$0xff]  ;;  %v214_v2 = vld [vmem:[%s592_s28 + $0x1d0] sm:$0xff] }
  0x4a   : > { %v279_v62 = vld [vmem:[%s597_s4 + $0x1c0] sm:$0xff]  ;;  %432 = vst [vmem:[%s633_s8 + $0x1b0] sm:$0xff] %v367_v59  ;;  %433 = vst.msk [vmem:[%s633_s8 + $0x1b8] sm:$0xff] %vm378_vm4, %v368_v60  ;;  %v280_v1 = vld [vmem:[%s597_s4 + $0x1c8] sm:$0xff] }
  0x4b   : > { %v369_v0 = vsel %vm651_vm5, %v212_v61, %v279_v62  ;;  %v281_v3 = vld [vmem:[%s597_s4 + $0x1d0] sm:$0xff]  ;;  %v370_v4 = vsel %vm655_vm6, %v213_v63, %v280_v1  ;;  %v215_v6 = vld [vmem:[%s592_s28 + $0x1d8] sm:$0xff]  ;;  %v216_v8 = vld [vmem:[%s592_s28 + $0x1e0] sm:$0xff] }
  0x4c   : > { %434 = vst [vmem:[%s633_s8 + $0x1c0] sm:$0xff] %v369_v0  ;;  %v371_v5 = vsel %vm651_vm5, %v214_v2, %v281_v3  ;;  %v282_v7 = vld [vmem:[%s597_s4 + $0x1d8] sm:$0xff]  ;;  %435 = vst.msk [vmem:[%s633_s8 + $0x1c8] sm:$0xff] %vm378_vm4, %v370_v4  ;;  %v283_v10 = vld [vmem:[%s597_s4 + $0x1e0] sm:$0xff] }
  0x4d   : > { %436 = vst [vmem:[%s633_s8 + $0x1d0] sm:$0xff] %v371_v5  ;;  %v372_v9 = vsel %vm655_vm6, %v215_v6, %v282_v7  ;;  %v217_v11 = vld [vmem:[%s592_s28 + $0x1e8] sm:$0xff]  ;;  %v373_v13 = vsel %vm651_vm5, %v216_v8, %v283_v10  ;;  %v218_v15 = vld [vmem:[%s592_s28 + $0x1f0] sm:$0xff]  ;;  %v219_v17 = vld [vmem:[%s592_s28 + $0x1f8] sm:$0xff] }
  0x4e   : > { %v284_v12 = vld [vmem:[%s597_s4 + $0x1e8] sm:$0xff]  ;;  %437 = vst.msk [vmem:[%s633_s8 + $0x1d8] sm:$0xff] %vm378_vm4, %v372_v9  ;;  %v285_v16 = vld [vmem:[%s597_s4 + $0x1f0] sm:$0xff]  ;;  %438 = vst [vmem:[%s633_s8 + $0x1e0] sm:$0xff] %v373_v13 }
  0x4f   : > { %v374_v14 = vsel %vm655_vm6, %v217_v11, %v284_v12  ;;  %v375_v18 = vsel %vm651_vm5, %v218_v15, %v285_v16  ;;  %v286_v19 = vld [vmem:[%s597_s4 + $0x1f8] sm:$0xff] }
  0x50   : > { %439 = vst.msk [vmem:[%s633_s8 + $0x1e8] sm:$0xff] %vm378_vm4, %v374_v14  ;;  %440 = vst [vmem:[%s633_s8 + $0x1f0] sm:$0xff] %v375_v18  ;;  %v376_v20 = vsel %vm655_vm6, %v219_v17, %v286_v19 }
  0x51   : > { %441 = vst.msk [vmem:[%s633_s8 + $0x1f8] sm:$0xff] %vm378_vm4, %v376_v20 }
  0x52 PF: > { %s19_s17 = sadd.s32 1, %s548_s17  }
  0x53   : > { %p16_p9 = scmp.ge.s32.totalorder %s19_s17, 6  }
  0x55   :  { %18 = sbr.rel (!%p16_p9) target bundleno = 16 (0x10), region = 60 }

</bundles_post_ra>
